<compile_context>
chip_gen: v6e
topology: v6e:2x2x1
jax: 0.10.0
libtpu: 0.0.40
codegen_flags: <defaults>
</compile_context>

<pallas_src>
import functools
import math

import jax
import jax.numpy as jnp
from jax.experimental import pallas as pl
from jax.experimental.pallas import tpu as pltpu


def _round_up(n, m):
    return ((n + m - 1) // m) * m


def _ctrnn_kernel(x_ref, ctx0_ref,
                  w_cc_ref, b_ctx_ref, w_x_ref, w_imz_ref,
                  w_hh_ref, b_hh_ref, w_ho_ref, b_ho_ref,
                  ln_g_ref, ln_b_ref,
                  out_ref, ctx_out_ref,
                  hid_scr,
                  *, num_steps, alpha, seq_len):
    """One time-chunk per grid step; context carried in the resident ctx output."""
    T_BLK, B, I = x_ref.shape
    C = w_cc_ref.shape[0]
    H = w_hh_ref.shape[0]
    CPAD = _round_up(C, 128)
    HPAD = _round_up(H, 128)

    f32 = jnp.float32
    relu = lambda v: jnp.maximum(v, 0.0)
    mm = lambda a, w: jnp.dot(a, w, preferred_element_type=f32)

    pid = pl.program_id(0)

    @pl.when(pid == 0)
    def _init():
        ctx_out_ref[...] = ctx0_ref[...]

    w_cc = w_cc_ref[...]            # (C, C)
    w_x = w_x_ref[...]              # (I, CPAD + HPAD + I*C)  fused x-side weights
    w_imz = w_imz_ref[...]          # (I*C, H)
    w_hh = w_hh_ref[...]            # (H, H)
    b_ctx = b_ctx_ref[...]          # (1, C)   == b_cc + b_ic
    b_hh = b_hh_ref[...]            # (1, H)
    ln_g = ln_g_ref[...]            # (1, H)
    ln_b = ln_b_ref[...]            # (1, H)

    def time_body(t, ctx):
        x_t = x_ref[t].astype(f32)                       # (B, I)
        # Single fused x-side matmul (hoisted out of the num_steps loop):
        # columns: [ x @ w_ic | x @ b_im_mat | x replicated C-wide per feature ]
        xw = mm(x_t, w_x)                                # (B, CPAD + HPAD + I*C)
        x_ctx = xw[:, :C] + b_ctx                        # (B, C)
        x_hid = xw[:, CPAD:CPAD + H]                     # (B, H)
        x_rep = xw[:, CPAD + HPAD:]                      # (B, I*C): x_rep[b,i*C+c]=x[b,i]

        def step(_, carry):
            ctx_c, _ = carry
            # z[b, i*C+c] = x[b,i] * ctx[b,c]  -> input-map contraction on the MXU.
            z = x_rep * jnp.concatenate([ctx_c] * I, axis=-1)     # (B, I*C)
            hidden = relu(mm(z, w_imz) + x_hid)                   # (B, H)
            # Context update uses the OLD context, as in the reference.
            ctx_new = relu(mm(ctx_c, w_cc) + x_ctx)               # (B, C)
            ctx_c = ctx_c * (1.0 - alpha) + ctx_new * alpha
            hn = mm(hidden, w_hh) + b_hh
            mu = jnp.mean(hn, axis=-1, keepdims=True)
            d = hn - mu
            var = jnp.mean(d * d, axis=-1, keepdims=True)         # two-pass LN
            hn = d * jax.lax.rsqrt(var + 1e-5) * ln_g + ln_b
            hidden = hidden + relu(hn)
            return ctx_c, hidden

        init = (ctx, jnp.zeros((B, H), f32))
        if num_steps == 1:
            ctx_next, hidden = step(0, init)
        else:
            ctx_next, hidden = jax.lax.fori_loop(0, num_steps, step, init,
                                                 unroll=(num_steps <= 4))

        idx = pl.multiple_of(t * B, B)
        hid_scr[pl.ds(idx, B), :] = hidden

        # Freeze the context on padded timesteps (when T % T_BLK != 0).
        t_left = seq_len - (pid * T_BLK + t)
        keep = jnp.clip(t_left, 0, 1).astype(f32)
        return ctx + keep * (ctx_next - ctx)

    ctx = jax.lax.fori_loop(0, T_BLK, time_body, ctx_out_ref[...])
    ctx_out_ref[...] = ctx

    # Hoisted output projection: one dense matmul + one lane-dense store per chunk.
    out = mm(hid_scr[...], w_ho_ref[...]) + b_ho_ref[...]          # (T_BLK*B, OPAD)
    out_ref[...] = out.astype(out_ref.dtype)


def input_map_rnn_forward(x, params, context=None, num_steps=1, t_blk=None):
    """Pallas implementation of InputMapRNNNet.forward (== InputMapCTRNN.forward)."""
    if num_steps < 1:
        raise ValueError("num_steps must be >= 1 (matches the PyTorch reference)")
    T, B, I = x.shape
    C = params["w_cc"].shape[0]
    H = params["w_hh"].shape[0]
    O = params["w_ho"].shape[0]
    if context is None:
        context = jnp.zeros((B, C), jnp.float32)

    f32 = jnp.float32
    B_pad = max(8, _round_up(B, 8))
    CPAD = _round_up(C, 128)
    HPAD = _round_up(H, 128)
    OPAD = _round_up(O, 128)

    # ---- time chunking (bounds VMEM; keeps DMA/compute overlap) --------------
    per_t_bytes = 4 * B_pad * (2 * I + 2 * OPAD + H)
    if t_blk is None:
        t_blk = max(1, min(T, 128, (2 << 20) // max(per_t_bytes, 1)))
    t_blk = max(1, min(int(t_blk), T))
    n_chunks = pl.cdiv(T, t_blk)
    T_pad = n_chunks * t_blk

    # ---- pad activations ------------------------------------------------------
    x_p = jnp.zeros((T_pad, B_pad, I), f32).at[:T, :B].set(x.astype(f32))
    ctx_p = jnp.zeros((B_pad, C), f32).at[:B].set(context.astype(f32))

    # ---- weight re-layout (plain-JAX glue, done once per call) ----------------
    w_cc_t = params["w_cc"].T.astype(f32)                            # (C, C)
    b_ctx = (params["b_cc"] + params["b_ic"]).reshape(1, C).astype(f32)
    w_ic_t = params["w_ic"].T.astype(f32)                            # (I, C)
    b_im_mat = params["b_im"].reshape(H, I).T.astype(f32)            # (I, H)
    rep = jnp.kron(jnp.eye(I, dtype=f32), jnp.ones((1, C), f32))     # (I, I*C)
    w_x = jnp.concatenate([
        jnp.zeros((I, CPAD), f32).at[:, :C].set(w_ic_t),
        jnp.zeros((I, HPAD), f32).at[:, :H].set(b_im_mat),
        rep,
    ], axis=1)                                                       # (I, CPAD+HPAD+I*C)
    # Re-order context2input_map so hidden = z @ w_imz, z[b, i*C+c] = x[b,i]*ctx[b,c].
    w_imz = (params["w_im"].reshape(H, I, C).transpose(1, 2, 0)
             .reshape(I * C, H).astype(f32))                         # (I*C, H)
    w_hh_t = params["w_hh"].T.astype(f32)                            # (H, H)
    b_hh = params["b_hh"].reshape(1, H).astype(f32)
    w_ho_p = jnp.zeros((H, OPAD), f32).at[:, :O].set(params["w_ho"].T.astype(f32))
    b_ho_p = jnp.zeros((1, OPAD), f32).at[:, :O].set(
        params["b_ho"].reshape(1, O).astype(f32))
    ln_g = params["ln_gamma"].reshape(1, H).astype(f32)
    ln_b = params["ln_beta"].reshape(1, H).astype(f32)
    alpha = float(params["alpha"])

    def const_spec(shape):
        nd = len(shape)
        return pl.BlockSpec(shape, lambda t, _n=nd: (0,) * _n)

    grid_spec = pltpu.PrefetchScalarGridSpec(
        num_scalar_prefetch=0,
        grid=(n_chunks,),
        in_specs=[
            pl.BlockSpec((t_blk, B_pad, I), lambda t: (t, 0, 0)),    # x chunk
            const_spec((B_pad, C)),                                  # initial context
            const_spec((C, C)), const_spec((1, C)),                  # ctx2ctx W^T, b_cc+b_ic
            const_spec((I, CPAD + HPAD + I * C)),                    # fused x-side weights
            const_spec((I * C, H)),                                  # input-map weight
            const_spec((H, H)), const_spec((1, H)),                  # hidden2hidden
            const_spec((H, OPAD)), const_spec((1, OPAD)),            # hidden2output (padded)
            const_spec((1, H)), const_spec((1, H)),                  # LayerNorm gamma/beta
        ],
        out_specs=[
            pl.BlockSpec((t_blk * B_pad, OPAD), lambda t: (t, 0)),   # lane-dense outputs
            const_spec((B_pad, C)),                                  # final context (carry)
        ],
        scratch_shapes=[pltpu.VMEM((t_blk * B_pad, H), f32)],        # per-chunk hidden
    )

    # Explicit VMEM budget: weights + double-buffered chunk streams + scratch.
    weight_bytes = 4 * (w_cc_t.size + b_ctx.size + w_x.size + w_imz.size +
                        w_hh_t.size + b_hh.size + w_ho_p.size + b_ho_p.size +
                        ln_g.size + ln_b.size + 2 * B_pad * C)
    stream_bytes = 4 * (t_blk * B_pad * (I + OPAD))
    scratch_bytes = 4 * (t_blk * B_pad * H)
    footprint = 2 * (weight_bytes + stream_bytes) + scratch_bytes
    vmem_limit = int(min(48 * 1024 * 1024, max(16 * 1024 * 1024, 2 * footprint)))

    kernel = functools.partial(_ctrnn_kernel, num_steps=num_steps, alpha=alpha,
                               seq_len=T)
    outs_flat, ctx_f = pl.pallas_call(
        kernel,
        out_shape=(jax.ShapeDtypeStruct((T_pad * B_pad, OPAD), f32),
                   jax.ShapeDtypeStruct((B_pad, C), f32)),
        grid_spec=grid_spec,
        compiler_params=pltpu.CompilerParams(
            dimension_semantics=("arbitrary",),      # serial recurrence over time chunks
            vmem_limit_bytes=vmem_limit),
    )(x_p, ctx_p,
      w_cc_t, b_ctx, w_x, w_imz, w_hh_t, b_hh, w_ho_p, b_ho_p, ln_g, ln_b)

    outs = outs_flat.reshape(T_pad, B_pad, OPAD)[:T, :B, :O]
    return outs, ctx_f[:B, :]


def reference_forward(x, params, context=None, num_steps=1):
    """Pure-JAX mirror of the PyTorch module, for correctness checking."""
    T, B, I = x.shape
    C = params["w_cc"].shape[0]
    H = params["w_hh"].shape[0]
    if context is None:
        context = jnp.zeros((B, C), jnp.float32)
    alpha = jnp.float32(params["alpha"])
    relu = lambda v: jnp.maximum(v, 0.0)
    outs = []
    for t in range(T):
        xt = x[t]
        out = None
        for _ in range(num_steps):
            im = (context @ params["w_im"].T + params["b_im"]).reshape(B, H, I)
            c_new = relu(context @ params["w_cc"].T + params["b_cc"]
                         + xt @ params["w_ic"].T + params["b_ic"])
            context = context * (1.0 - alpha) + c_new * alpha
            hidden = relu(jnp.einsum("bhi,bi->bh", im, xt))
            hn = hidden @ params["w_hh"].T + params["b_hh"]
            mu = hn.mean(-1, keepdims=True)
            var = ((hn - mu) ** 2).mean(-1, keepdims=True)
            hn = (hn - mu) * jax.lax.rsqrt(var + 1e-5) * params["ln_gamma"] \
                + params["ln_beta"]
            hidden = hidden + relu(hn)
            out = hidden @ params["w_ho"].T + params["b_ho"]
        outs.append(out)
    return jnp.stack(outs, 0), context


def init_params(key, input_size, context_size, hidden_size, output_size, dt=None):
    """Deterministic init mimicking nn.Linear defaults (uniform +/-1/sqrt(fan_in))."""
    def linear(k, out_f, in_f):
        k1, k2 = jax.random.split(k)
        bound = 1.0 / math.sqrt(in_f)
        w = jax.random.uniform(k1, (out_f, in_f), jnp.float32, -bound, bound)
        b = jax.random.uniform(k2, (out_f,), jnp.float32, -bound, bound)
        return w, b

    ks = jax.random.split(key, 5)
    w_cc, b_cc = linear(ks[0], context_size, context_size)
    w_ic, b_ic = linear(ks[1], context_size, input_size)
    w_im, b_im = linear(ks[2], input_size * hidden_size, context_size)
    w_hh, b_hh = linear(ks[3], hidden_size, hidden_size)
    w_ho, b_ho = linear(ks[4], output_size, hidden_size)
    alpha = 1.0 if dt is None else dt / 100.0
    return dict(w_cc=w_cc, b_cc=b_cc, w_ic=w_ic, b_ic=b_ic,
                w_im=w_im, b_im=b_im, w_hh=w_hh, b_hh=b_hh,
                w_ho=w_ho, b_ho=b_ho,
                ln_gamma=jnp.ones((hidden_size,), jnp.float32),
                ln_beta=jnp.zeros((hidden_size,), jnp.float32),
                alpha=alpha)


if __name__ == "__main__":
    T, B = 8, 2
    input_size, context_size, hidden_size, output_size = 4, 32, 32, 8

    key = jax.random.PRNGKey(0)
    kx, kp, kc = jax.random.split(key, 3)
    params = init_params(kp, input_size, context_size, hidden_size, output_size)
    x = jax.random.normal(kx, (T, B, input_size), jnp.float32)

    outs, ctx = input_map_rnn_forward(x, params, num_steps=1)
    jax.block_until_ready((outs, ctx))

    ref_outs, ref_ctx = reference_forward(x, params, num_steps=1)
    assert outs.shape == (T, B, output_size) and ctx.shape == (B, context_size)
    assert jnp.allclose(outs, ref_outs, atol=2e-4, rtol=2e-4)
    assert jnp.allclose(ctx, ref_ctx, atol=2e-4, rtol=2e-4)

    # Exercise multi-chunk grid (T % T_BLK != 0), num_steps > 1 and a nonzero context.
    T2 = 10
    x2 = jax.random.normal(kx, (T2, B, input_size), jnp.float32)
    ctx0 = 0.1 * jax.random.normal(kc, (B, context_size), jnp.float32)
    outs2, ctx2 = input_map_rnn_forward(x2, params, context=ctx0, num_steps=2, t_blk=4)
    jax.block_until_ready((outs2, ctx2))
    ref_outs2, ref_ctx2 = reference_forward(x2, params, context=ctx0, num_steps=2)
    assert jnp.allclose(outs2, ref_outs2, atol=3e-4, rtol=3e-4)
    assert jnp.allclose(ctx2, ref_ctx2, atol=3e-4, rtol=3e-4)

    print("KERNEL_OK")
</pallas_src>

<mosaic_0001>
module attributes {stable_mosaic.version = 11 : i64} {
  func.func @_ctrnn_kernel(%arg0: i32, %arg1: memref<8x8x4xf32, #tpu.memory_space<vmem>>, %arg2: memref<8x32xf32, #tpu.memory_space<vmem>>, %arg3: memref<32x32xf32, #tpu.memory_space<vmem>>, %arg4: memref<1x32xf32, #tpu.memory_space<vmem>>, %arg5: memref<4x384xf32, #tpu.memory_space<vmem>>, %arg6: memref<128x32xf32, #tpu.memory_space<vmem>>, %arg7: memref<32x32xf32, #tpu.memory_space<vmem>>, %arg8: memref<1x32xf32, #tpu.memory_space<vmem>>, %arg9: memref<32x128xf32, #tpu.memory_space<vmem>>, %arg10: memref<1x128xf32, #tpu.memory_space<vmem>>, %arg11: memref<1x32xf32, #tpu.memory_space<vmem>>, %arg12: memref<1x32xf32, #tpu.memory_space<vmem>>, %arg13: memref<64x128xf32, #tpu.memory_space<vmem>>, %arg14: memref<8x32xf32, #tpu.memory_space<vmem>>, %arg15: memref<64x32xf32, #tpu.memory_space<vmem>>) attributes {dimension_semantics = [#tpu.dimension_semantics<arbitrary>], iteration_bounds = array<i64: 1>, scalar_prefetch = 0 : i64, scratch_operands = 1 : i64, tpu.core_type = #tpu.core_type<tc>, window_params = [{transform_indices = @transform_0, window_bounds = array<i64: 8, 8, 4>}, {pipeline_mode = #tpu.pipeline_mode<synchronous>, transform_indices = @transform_1, window_bounds = array<i64: 8, 32>}, {pipeline_mode = #tpu.pipeline_mode<synchronous>, transform_indices = @transform_2, window_bounds = array<i64: 32, 32>}, {pipeline_mode = #tpu.pipeline_mode<synchronous>, transform_indices = @transform_3, window_bounds = array<i64: 1, 32>}, {pipeline_mode = #tpu.pipeline_mode<synchronous>, transform_indices = @transform_4, window_bounds = array<i64: 4, 384>}, {pipeline_mode = #tpu.pipeline_mode<synchronous>, transform_indices = @transform_5, window_bounds = array<i64: 128, 32>}, {pipeline_mode = #tpu.pipeline_mode<synchronous>, transform_indices = @transform_6, window_bounds = array<i64: 32, 32>}, {pipeline_mode = #tpu.pipeline_mode<synchronous>, transform_indices = @transform_7, window_bounds = array<i64: 1, 32>}, {pipeline_mode = #tpu.pipeline_mode<synchronous>, transform_indices = @transform_8, window_bounds = array<i64: 32, 128>}, {pipeline_mode = #tpu.pipeline_mode<synchronous>, transform_indices = @transform_9, window_bounds = array<i64: 1, 128>}, {pipeline_mode = #tpu.pipeline_mode<synchronous>, transform_indices = @transform_10, window_bounds = array<i64: 1, 32>}, {pipeline_mode = #tpu.pipeline_mode<synchronous>, transform_indices = @transform_11, window_bounds = array<i64: 1, 32>}, {transform_indices = @transform_12, window_bounds = array<i64: 64, 128>}, {pipeline_mode = #tpu.pipeline_mode<synchronous>, transform_indices = @transform_13, window_bounds = array<i64: 8, 32>}]} {
    %c0_i32 = arith.constant 0 : i32
    %0 = arith.cmpi eq, %arg0, %c0_i32 : i32
    %1 = arith.extui %0 : i1 to i32
    %c0_i32_0 = arith.constant 0 : i32
    %2 = arith.cmpi ne, %1, %c0_i32_0 : i32
    scf.if %2 {
      %c0_30 = arith.constant 0 : index
      %c0_31 = arith.constant 0 : index
      %22 = vector.load %arg2[%c0_30, %c0_31] : memref<8x32xf32, #tpu.memory_space<vmem>>, vector<8x32xf32>
      %c0_32 = arith.constant 0 : index
      %c0_33 = arith.constant 0 : index
      %23 = vector.load %arg14[%c0_32, %c0_33] : memref<8x32xf32, #tpu.memory_space<vmem>>, vector<8x32xf32>
      tpu.vector_store %arg14[%c0_32, %c0_33], %22 {strides = array<i32>} : memref<8x32xf32, #tpu.memory_space<vmem>>, vector<8x32xf32>,
    } else {
    }
    %c0 = arith.constant 0 : index
    %c0_1 = arith.constant 0 : index
    %3 = vector.load %arg3[%c0, %c0_1] : memref<32x32xf32, #tpu.memory_space<vmem>>, vector<32x32xf32>
    %c0_2 = arith.constant 0 : index
    %c0_3 = arith.constant 0 : index
    %4 = vector.load %arg5[%c0_2, %c0_3] : memref<4x384xf32, #tpu.memory_space<vmem>>, vector<4x384xf32>
    %c0_4 = arith.constant 0 : index
    %c0_5 = arith.constant 0 : index
    %5 = vector.load %arg6[%c0_4, %c0_5] : memref<128x32xf32, #tpu.memory_space<vmem>>, vector<128x32xf32>
    %c0_6 = arith.constant 0 : index
    %c0_7 = arith.constant 0 : index
    %6 = vector.load %arg7[%c0_6, %c0_7] : memref<32x32xf32, #tpu.memory_space<vmem>>, vector<32x32xf32>
    %c0_8 = arith.constant 0 : index
    %c0_9 = arith.constant 0 : index
    %7 = vector.load %arg4[%c0_8, %c0_9] : memref<1x32xf32, #tpu.memory_space<vmem>>, vector<1x32xf32>
    %c0_10 = arith.constant 0 : index
    %c0_11 = arith.constant 0 : index
    %8 = vector.load %arg8[%c0_10, %c0_11] : memref<1x32xf32, #tpu.memory_space<vmem>>, vector<1x32xf32>
    %c0_12 = arith.constant 0 : index
    %c0_13 = arith.constant 0 : index
    %9 = vector.load %arg11[%c0_12, %c0_13] : memref<1x32xf32, #tpu.memory_space<vmem>>, vector<1x32xf32>
    %c0_14 = arith.constant 0 : index
    %c0_15 = arith.constant 0 : index
    %10 = vector.load %arg12[%c0_14, %c0_15] : memref<1x32xf32, #tpu.memory_space<vmem>>, vector<1x32xf32>
    %c0_16 = arith.constant 0 : index
    %c0_17 = arith.constant 0 : index
    %11 = vector.load %arg14[%c0_16, %c0_17] : memref<8x32xf32, #tpu.memory_space<vmem>>, vector<8x32xf32>
    %c0_i32_18 = arith.constant 0 : i32
    %c8_i32 = arith.constant 8 : i32
    %12 = arith.addi %c0_i32_18, %c8_i32 : i32
    %c1_i32 = arith.constant 1 : i32
    %13 = scf.for %arg16 = %c0_i32_18 to %12 step %c1_i32 iter_args(%arg17 = %11) -> (vector<8x32xf32>)  : i32 {
      %22 = arith.index_cast %arg16 : i32 to index
      %c0_30 = arith.constant 0 : index
      %c0_31 = arith.constant 0 : index
      %23 = vector.load %arg1[%22, %c0_30, %c0_31] : memref<8x8x4xf32, #tpu.memory_space<vmem>>, vector<1x8x4xf32>
      %24 = vector.shape_cast %23 : vector<1x8x4xf32> to vector<8x4xf32>
      %cst_32 = arith.constant dense<0.000000e+00> : vector<8x384xf32>
      %25 = tpu.matmul %24, %4, %cst_32 {dimension_numbers = #tpu.dot_dimension_numbers<[1], [0], [0], [1], [0, 0, 1, 1], [], []>} : vector<8x4xf32>, vector<4x384xf32>, vector<8x384xf32> -> vector<8x384xf32>
      %26 = vector.extract_strided_slice %25 {offsets = [0, 0], sizes = [8, 32], strides = [1, 1]} : vector<8x384xf32> to vector<8x32xf32>
      %27 = vector.broadcast %7 : vector<1x32xf32> to vector<8x32xf32>
      %28 = arith.addf %26, %27 : vector<8x32xf32>
      %29 = vector.extract_strided_slice %25 {offsets = [0, 128], sizes = [8, 32], strides = [1, 1]} : vector<8x384xf32> to vector<8x32xf32>
      %30 = vector.extract_strided_slice %25 {offsets = [0, 256], sizes = [8, 128], strides = [1, 1]} : vector<8x384xf32> to vector<8x128xf32>
      %31 = tpu.concatenate %arg17, %arg17, %arg17, %arg17 in 1 : vector<8x32xf32>, vector<8x32xf32>, vector<8x32xf32>, vector<8x32xf32> -> vector<8x128xf32>
      %32 = arith.mulf %30, %31 : vector<8x128xf32>
      %cst_33 = arith.constant dense<0.000000e+00> : vector<8x32xf32>
      %33 = tpu.matmul %32, %5, %cst_33 {dimension_numbers = #tpu.dot_dimension_numbers<[1], [0], [0], [1], [0, 0, 1, 1], [], []>} : vector<8x128xf32>, vector<128x32xf32>, vector<8x32xf32> -> vector<8x32xf32>
      %34 = arith.addf %33, %29 : vector<8x32xf32>
      %cst_34 = arith.constant 0.000000e+00 : f32
      %35 = vector.broadcast %cst_34 : f32 to vector<8x32xf32>
      %36 = arith.maximumf %34, %35 : vector<8x32xf32>
      %cst_35 = arith.constant dense<0.000000e+00> : vector<8x32xf32>
      %37 = tpu.matmul %arg17, %3, %cst_35 {dimension_numbers = #tpu.dot_dimension_numbers<[1], [0], [0], [1], [0, 0, 1, 1], [], []>} : vector<8x32xf32>, vector<32x32xf32>, vector<8x32xf32> -> vector<8x32xf32>
      %38 = arith.addf %37, %28 : vector<8x32xf32>
      %cst_36 = arith.constant 0.000000e+00 : f32
      %39 = vector.broadcast %cst_36 : f32 to vector<8x32xf32>
      %40 = arith.maximumf %38, %39 : vector<8x32xf32>
      %cst_37 = arith.constant 0.000000e+00 : f32
      %41 = vector.broadcast %cst_37 : f32 to vector<8x32xf32>
      %42 = arith.mulf %arg17, %41 : vector<8x32xf32>
      %cst_38 = arith.constant 1.000000e+00 : f32
      %43 = vector.broadcast %cst_38 : f32 to vector<8x32xf32>
      %44 = arith.mulf %40, %43 : vector<8x32xf32>
      %45 = arith.addf %42, %44 : vector<8x32xf32>
      %cst_39 = arith.constant dense<0.000000e+00> : vector<8x32xf32>
      %46 = tpu.matmul %36, %6, %cst_39 {dimension_numbers = #tpu.dot_dimension_numbers<[1], [0], [0], [1], [0, 0, 1, 1], [], []>} : vector<8x32xf32>, vector<32x32xf32>, vector<8x32xf32> -> vector<8x32xf32>
      %47 = vector.broadcast %8 : vector<1x32xf32> to vector<8x32xf32>
      %48 = arith.addf %46, %47 : vector<8x32xf32>
      %cst_40 = arith.constant dense<0.000000e+00> : vector<8xf32>
      %49 = vector.multi_reduction <add>, %48, %cst_40 [1] : vector<8x32xf32> to vector<8xf32>
      %50 = vector.shape_cast %49 : vector<8xf32> to vector<8x1xf32>
      %cst_41 = arith.constant 3.200000e+01 : f32
      %51 = vector.broadcast %cst_41 : f32 to vector<8x1xf32>
      %52 = arith.divf %50, %51 : vector<8x1xf32>
      %53 = vector.broadcast %52 : vector<8x1xf32> to vector<8x32xf32>
      %54 = arith.subf %48, %53 : vector<8x32xf32>
      %55 = arith.mulf %54, %54 : vector<8x32xf32>
      %cst_42 = arith.constant dense<0.000000e+00> : vector<8xf32>
      %56 = vector.multi_reduction <add>, %55, %cst_42 [1] : vector<8x32xf32> to vector<8xf32>
      %57 = vector.shape_cast %56 : vector<8xf32> to vector<8x1xf32>
      %cst_43 = arith.constant 3.200000e+01 : f32
      %58 = vector.broadcast %cst_43 : f32 to vector<8x1xf32>
      %59 = arith.divf %57, %58 : vector<8x1xf32>
      %cst_44 = arith.constant 9.99999974E-6 : f32
      %60 = vector.broadcast %cst_44 : f32 to vector<8x1xf32>
      %61 = arith.addf %59, %60 : vector<8x1xf32>
      %62 = math.rsqrt %61 : vector<8x1xf32>
      %63 = vector.broadcast %62 : vector<8x1xf32> to vector<8x32xf32>
      %64 = arith.mulf %54, %63 : vector<8x32xf32>
      %65 = vector.broadcast %9 : vector<1x32xf32> to vector<8x32xf32>
      %66 = arith.mulf %64, %65 : vector<8x32xf32>
      %67 = vector.broadcast %10 : vector<1x32xf32> to vector<8x32xf32>
      %68 = arith.addf %66, %67 : vector<8x32xf32>
      %cst_45 = arith.constant 0.000000e+00 : f32
      %69 = vector.broadcast %cst_45 : f32 to vector<8x32xf32>
      %70 = arith.maximumf %68, %69 : vector<8x32xf32>
      %71 = arith.addf %36, %70 : vector<8x32xf32>
      %c8_i32_46 = arith.constant 8 : i32
      %72 = arith.muli %arg16, %c8_i32_46 : i32
      %73 = tpu.assume_multiple %72, 8 : i32
      %74 = arith.index_cast %73 : i32 to index
      %c0_47 = arith.constant 0 : index
      %75 = vector.load %arg15[%74, %c0_47] : memref<64x32xf32, #tpu.memory_space<vmem>>, vector<8x32xf32>
      tpu.vector_store %arg15[%74, %c0_47], %71 {strides = array<i32>} : memref<64x32xf32, #tpu.memory_space<vmem>>, vector<8x32xf32>,
      %c8_i32_48 = arith.constant 8 : i32
      %76 = arith.muli %arg0, %c8_i32_48 : i32
      %77 = arith.addi %76, %arg16 : i32
      %c8_i32_49 = arith.constant 8 : i32
      %78 = arith.subi %c8_i32_49, %77 : i32
      %c0_i32_50 = arith.constant 0 : i32
      %c1_i32_51 = arith.constant 1 : i32
      %79 = arith.maxsi %c0_i32_50, %78 : i32
      %80 = arith.minsi %c1_i32_51, %79 : i32
      %81 = arith.sitofp %80 : i32 to f32
      %82 = arith.subf %45, %arg17 : vector<8x32xf32>
      %83 = vector.broadcast %81 : f32 to vector<8x32xf32>
      %84 = arith.mulf %83, %82 : vector<8x32xf32>
      %85 = arith.addf %arg17, %84 : vector<8x32xf32>
      scf.yield %85 : vector<8x32xf32>
    }
    %c8_i32_19 = arith.constant 8 : i32
    %c0_20 = arith.constant 0 : index
    %c0_21 = arith.constant 0 : index
    %14 = vector.load %arg14[%c0_20, %c0_21] : memref<8x32xf32, #tpu.memory_space<vmem>>, vector<8x32xf32>
    tpu.vector_store %arg14[%c0_20, %c0_21], %13 {strides = array<i32>} : memref<8x32xf32, #tpu.memory_space<vmem>>, vector<8x32xf32>,
    %c0_22 = arith.constant 0 : index
    %c0_23 = arith.constant 0 : index
    %15 = vector.load %arg15[%c0_22, %c0_23] : memref<64x32xf32, #tpu.memory_space<vmem>>, vector<64x32xf32>
    %c0_24 = arith.constant 0 : index
    %c0_25 = arith.constant 0 : index
    %16 = vector.load %arg9[%c0_24, %c0_25] : memref<32x128xf32, #tpu.memory_space<vmem>>, vector<32x128xf32>
    %cst = arith.constant dense<0.000000e+00> : vector<64x128xf32>
    %17 = tpu.matmul %15, %16, %cst {dimension_numbers = #tpu.dot_dimension_numbers<[1], [0], [0], [1], [0, 0, 1, 1], [], []>} : vector<64x32xf32>, vector<32x128xf32>, vector<64x128xf32> -> vector<64x128xf32>
    %c0_26 = arith.constant 0 : index
    %c0_27 = arith.constant 0 : index
    %18 = vector.load %arg10[%c0_26, %c0_27] : memref<1x128xf32, #tpu.memory_space<vmem>>, vector<1x128xf32>
    %19 = vector.broadcast %18 : vector<1x128xf32> to vector<64x128xf32>
    %20 = arith.addf %17, %19 : vector<64x128xf32>
    %c0_28 = arith.constant 0 : index
    %c0_29 = arith.constant 0 : index
    %21 = vector.load %arg13[%c0_28, %c0_29] : memref<64x128xf32, #tpu.memory_space<vmem>>, vector<64x128xf32>
    tpu.vector_store %arg13[%c0_28, %c0_29], %20 {strides = array<i32>} : memref<64x128xf32, #tpu.memory_space<vmem>>, vector<64x128xf32>,
    return
  }
  func.func @transform_0(%arg0: i32) -> (i32, i32, i32) {
    %c0_i32 = arith.constant 0 : i32
    %c0_i32_0 = arith.constant 0 : i32
    %c0_i32_1 = arith.constant 0 : i32
    return %arg0, %c0_i32, %c0_i32_0 : i32, i32, i32
  }
  func.func @transform_1(%arg0: i32) -> (i32, i32) {
    %c0_i32 = arith.constant 0 : i32
    %c0_i32_0 = arith.constant 0 : i32
    %c0_i32_1 = arith.constant 0 : i32
    return %c0_i32, %c0_i32_0 : i32, i32
  }
  func.func @transform_2(%arg0: i32) -> (i32, i32) {
    %c0_i32 = arith.constant 0 : i32
    %c0_i32_0 = arith.constant 0 : i32
    %c0_i32_1 = arith.constant 0 : i32
    return %c0_i32, %c0_i32_0 : i32, i32
  }
  func.func @transform_3(%arg0: i32) -> (i32, i32) {
    %c0_i32 = arith.constant 0 : i32
    %c0_i32_0 = arith.constant 0 : i32
    %c0_i32_1 = arith.constant 0 : i32
    return %c0_i32, %c0_i32_0 : i32, i32
  }
  func.func @transform_4(%arg0: i32) -> (i32, i32) {
    %c0_i32 = arith.constant 0 : i32
    %c0_i32_0 = arith.constant 0 : i32
    %c0_i32_1 = arith.constant 0 : i32
    return %c0_i32, %c0_i32_0 : i32, i32
  }
  func.func @transform_5(%arg0: i32) -> (i32, i32) {
    %c0_i32 = arith.constant 0 : i32
    %c0_i32_0 = arith.constant 0 : i32
    %c0_i32_1 = arith.constant 0 : i32
    return %c0_i32, %c0_i32_0 : i32, i32
  }
  func.func @transform_6(%arg0: i32) -> (i32, i32) {
    %c0_i32 = arith.constant 0 : i32
    %c0_i32_0 = arith.constant 0 : i32
    %c0_i32_1 = arith.constant 0 : i32
    return %c0_i32, %c0_i32_0 : i32, i32
  }
  func.func @transform_7(%arg0: i32) -> (i32, i32) {
    %c0_i32 = arith.constant 0 : i32
    %c0_i32_0 = arith.constant 0 : i32
    %c0_i32_1 = arith.constant 0 : i32
    return %c0_i32, %c0_i32_0 : i32, i32
  }
  func.func @transform_8(%arg0: i32) -> (i32, i32) {
    %c0_i32 = arith.constant 0 : i32
    %c0_i32_0 = arith.constant 0 : i32
    %c0_i32_1 = arith.constant 0 : i32
    return %c0_i32, %c0_i32_0 : i32, i32
  }
  func.func @transform_9(%arg0: i32) -> (i32, i32) {
    %c0_i32 = arith.constant 0 : i32
    %c0_i32_0 = arith.constant 0 : i32
    %c0_i32_1 = arith.constant 0 : i32
    return %c0_i32, %c0_i32_0 : i32, i32
  }
  func.func @transform_10(%arg0: i32) -> (i32, i32) {
    %c0_i32 = arith.constant 0 : i32
    %c0_i32_0 = arith.constant 0 : i32
    %c0_i32_1 = arith.constant 0 : i32
    return %c0_i32, %c0_i32_0 : i32, i32
  }
  func.func @transform_11(%arg0: i32) -> (i32, i32) {
    %c0_i32 = arith.constant 0 : i32
    %c0_i32_0 = arith.constant 0 : i32
    %c0_i32_1 = arith.constant 0 : i32
    return %c0_i32, %c0_i32_0 : i32, i32
  }
  func.func @transform_12(%arg0: i32) -> (i32, i32) {
    %c0_i32 = arith.constant 0 : i32
    %c0_i32_0 = arith.constant 0 : i32
    return %arg0, %c0_i32 : i32, i32
  }
  func.func @transform_13(%arg0: i32) -> (i32, i32) {
    %c0_i32 = arith.constant 0 : i32
    %c0_i32_0 = arith.constant 0 : i32
    %c0_i32_1 = arith.constant 0 : i32
    return %c0_i32, %c0_i32_0 : i32, i32
  }
}

</mosaic_0001>

<bundles_post_ra>
// kernel: tpu_custom_call.1
= control target key start
LH: loop header
LB: loop body
LE: loop exit
PB: predicated region body
PF: predicated region fallthrough
CT: control target
= control target key end

     0   :  { %19 = vsyncpa [#allocation4], 0  ;;  %s1359_s0 = inlined_call_operand.vmem [shape: f32[8,8,4], index: 0, kind: input, shape index: {}]   ;;  %s1360_s1 = inlined_call_operand.vmem [shape: f32[8,32], index: 1, kind: input, shape index: {}]   ;;  %s1361_s2 = inlined_call_operand.vmem [shape: f32[32,32], index: 2, kind: input, shape index: {}]   ;;  %s1362_s3 = inlined_call_operand.vmem [shape: f32[1,32], index: 3, kind: input, shape index: {}]   ;;  %s1363_s4 = inlined_call_operand.vmem [shape: f32[4,384], index: 4, kind: input, shape index: {}]   ;;  %s1364_s5 = inlined_call_operand.vmem [shape: f32[128,32], index: 5, kind: input, shape index: {}]   ;;  %s1365_s6 = inlined_call_operand.vmem [shape: f32[32,32], index: 6, kind: input, shape index: {}]   ;;  %s1366_s7 = inlined_call_operand.vmem [shape: f32[1,32], index: 7, kind: input, shape index: {}]   ;;  %s1367_s8 = inlined_call_operand.vmem [shape: f32[32,128], index: 8, kind: input, shape index: {}]   ;;  %s1368_s9 = inlined_call_operand.vmem [shape: f32[1,128], index: 9, kind: input, shape index: {}]   ;;  %s1369_s10 = inlined_call_operand.vmem [shape: f32[1,32], index: 10, kind: input, shape index: {}]   ;;  %s1370_s11 = inlined_call_operand.vmem [shape: f32[1,32], index: 11, kind: input, shape index: {}]   ;;  %s1371_s12 = inlined_call_operand.hbm [shape: f32[64,128], index: 12, kind: output, shape index: {0}]   ;;  %s1372_s13 = inlined_call_operand.hbm [shape: f32[8,32], index: 13, kind: output, shape index: {1}]  }
   0x1   :  { %20 = vsyncpa [#allocation6], 0  ;;  %v49_v0 = vld [vmem:[%s1360_s1] sm:$0xff]  ;;  %vm50_vm0 = vcmask 261120   ;;  %v1078_v2 = vld [vmem:[%s1361_s2 + $0x8] sm:$0xff] }
   0x2   :  { %v1072_v1 = vld [vmem:[%s1361_s2] sm:$0xff]  ;;  %51 = vst.msk [vmem:[#allocation5] sm:$0xff] %vm50_vm0, %v49_v0  ;;  %v1083_v3 = vld [vmem:[%s1361_s2 + $0x10] sm:$0xff]  ;;  %v1088_v4 = vld [vmem:[%s1361_s2 + $0x18] sm:$0xff] }
   0x3   :  { %v1093_v5 = vld [vmem:[%s1363_s4] sm:$0xff]  ;;  %v1098_v6 = vld [vmem:[%s1363_s4 + $0x8] sm:$0xf]  ;;  %v1113_v9 = vld [vmem:[%s1364_s5 + $0x10] sm:$0xff] }
   0x4   :  { %v1103_v7 = vld [vmem:[%s1364_s5] sm:$0xff]  ;;  %v1108_v8 = vld [vmem:[%s1364_s5 + $0x8] sm:$0xff]  ;;  %v1118_v10 = vld [vmem:[%s1364_s5 + $0x18] sm:$0xff] }
   0x5   :  { %v1123_v11 = vld [vmem:[%s1364_s5 + $0x20] sm:$0xff]  ;;  %v1128_v12 = vld [vmem:[%s1364_s5 + $0x28] sm:$0xff]  ;;  %v1133_v13 = vld [vmem:[%s1364_s5 + $0x30] sm:$0xff] }
   0x6   :  { %v1138_v14 = vld [vmem:[%s1364_s5 + $0x38] sm:$0xff]  ;;  %v1143_v15 = vld [vmem:[%s1364_s5 + $0x40] sm:$0xff]  ;;  %v1148_v16 = vld [vmem:[%s1364_s5 + $0x48] sm:$0xff] }
   0x7   :  { %v1153_v17 = vld [vmem:[%s1364_s5 + $0x50] sm:$0xff]  ;;  %v1158_v18 = vld [vmem:[%s1364_s5 + $0x58] sm:$0xff]  ;;  %v1163_v19 = vld [vmem:[%s1364_s5 + $0x60] sm:$0xff] }
   0x8   :  { %v1168_v20 = vld [vmem:[%s1364_s5 + $0x68] sm:$0xff]  ;;  %v1173_v21 = vld [vmem:[%s1364_s5 + $0x70] sm:$0xff]  ;;  %v1178_v22 = vld [vmem:[%s1364_s5 + $0x78] sm:$0xff] }
   0x9   :  { %v82_v23 = vld [vmem:[#allocation5] sm:$0xff]   ;;  %v1188_v25 = vld [vmem:[%s1365_s6 + $0x8] sm:$0xff]  ;;  %v1193_v26 = vld [vmem:[%s1365_s6 + $0x10] sm:$0xff] }
   0xa   :  { %v1183_v24 = vld [vmem:[%s1365_s6] sm:$0xff]  ;;  %v1198_v27 = vld [vmem:[%s1365_s6 + $0x18] sm:$0xff]  ;;  %s1222_s6 = smov 0  }
   0xb   :  { %v1203_v28 = vld [vmem:[%s1362_s3] ss:$0 sm:$0xff] }
   0xc   :  { %v1208_v29 = vld [vmem:[%s1366_s7] ss:$0 sm:$0xff] }
   0xd   :  { %v1213_v30 = vld [vmem:[%s1369_s10] ss:$0 sm:$0xff] }
   0xe   :  { %v1218_v31 = vld [vmem:[%s1370_s11] ss:$0 sm:$0xff] }
   0xf LB: > { %v95_v32 = vcombine.high %v1093_v5, %v1093_v5  ;;  %vm100_vm1 = vcmask 1043456   ;;  %v987_v33 = vmov 0.0   ;;  %s741_s3 = sshll.u32 %s985_s6, 3  ;;  %vm96_vm2 = vcmask 31744   ;;  %s988_s27 = smov 32   ;;  %s985_s6 = sphi %s1222_s6, %s88_s6   ;;  %v981_v23 = vphi %v82_v23, %v1373_v23  }
  0x10   : > { %171 = vmatprep.mubr.f32.mxu1 %v987_v33  ;;  %815 = vmatprep.subr.mxu0 %v987_v33  ;;  %s91_s11 = scalar_lea.vmem %s1359_s0, %s741_s3  ;;  %vm989_vm3 = vmmov 0   ;;  %s990_s4 = smov 64   ;;  %vm267_vm4 = vcmask 523264   ;;  %vm269_vm5 = vcmask 785408   ;;  %v416_v49 = vmul.f32 0.0, %v981_v23 }
  0x11   : > { %742 = vmatprep.subr.msk.mxu1 %vm100_vm1, %v95_v32  ;;  %816 = vmatpush3.msra.mxu0 %v1178_v22  ;;  %v92_v34 = vld [vmem:[%s91_s11] sm:$0xff]  ;;  %s991_s28 = smov 96   ;;  %s531_s29 = ssub.s32 8, %s985_s6 }
  0x12   : > { %743 = vmatpush1.msk.msra.mxu1 %vm100_vm1, %v1093_v5  ;;  %256 = vrot.lane.b32.xlu0 %v981_v23, %s988_s27  ;;  %p532_p0 = scmp.gt.s32.totalorder %s531_s29, 0  ;;  %p753_p1 = scmp.lt.s32.totalorder %s531_s29, 1 }
  0x13   : > { %810 = vmatprep.subr.mxu1 %v987_v33  ;;  %817 = vmatprep.subr.mxu0 %v987_v33  ;;  %s527_s14 = scalar_lea.vmem [#allocation2], %s741_s3  ;;  %s88_s6 = sadd.s32 1, %s985_s6  }
  0x14   : > { %744 = vmatmul.mubr.msk.f32.vlgmr.msra.gmra.mxu1 %vm96_vm2, %v92_v34  ;;  %818 = vmatpush3.msra.mxu0 %v1173_v21  ;;  %s1375_s29 = smov (!%p532_p0, %s531_s29), 0  ;;  %p85_p2 = scmp.ge.s32.totalorder %s88_s6, 8  }
  0x15   : > { %811 = vmatpush3.msk.msra.mxu1 %vm100_vm1, %v1098_v6  ;;  %812 = vmatprep.mubr.msk.f32.mxu1 %vm989_vm3, %v987_v33  ;;  %s1377_s29 = smov (!%p753_p1, %s1375_s29), 1 }
  0x16   : > { %850 = vmatprep.subr.mxu1 %v987_v33  ;;  %259 = vrot.lane.b32.xlu0 %v981_v23, %s990_s4  ;;  %s536_s30 = scvt.s32.f32 %s1377_s29 }
  0x17   : > { %262 = vrot.lane.b32.xlu1 %v981_v23, %s991_s28  ;;  %819 = vmatprep.subr.mxu0 %v987_v33 }
  0x18   : > { %813 = vmatmul.mubr.msk.f32.vlgmr.msra.gmra.mxu1 %vm96_vm2, %v92_v34  ;;  %820 = vmatpush3.msra.mxu0 %v1168_v20  ;;  %v538_v53 = vstv %s536_s30 }
  0x19   : > { %851 = vmatpush3.msra.mxu1 %v1088_v4  ;;  %858 = vmatprep.mubr.msk.f32.mxu1 %vm989_vm3, %v987_v33 }
  0x1a   : > { %852 = vmatprep.subr.mxu1 %v987_v33  ;;  %821 = vmatprep.subr.mxu0 %v987_v33 }
  0x1b   : > { %853 = vmatpush3.msra.mxu1 %v1083_v3  ;;  %822 = vmatpush3.msra.mxu0 %v1163_v19 }
  0x1c   : > { %854 = vmatprep.subr.mxu1 %v987_v33  ;;  %823 = vmatprep.subr.mxu0 %v987_v33 }
  0x1d   : > { %855 = vmatpush3.msra.mxu1 %v1078_v2  ;;  %824 = vmatpush3.msra.mxu0 %v1158_v18 }
  0x1e   : > { %856 = vmatprep.subr.mxu1 %v987_v33  ;;  %825 = vmatprep.subr.mxu0 %v987_v33 }
  0x1f   : > { %857 = vmatpush3.msra.mxu1 %v1072_v1  ;;  %826 = vmatpush3.msra.mxu0 %v1153_v17  ;;  %v551_v1 = vld [vmem:[%s1367_s8] sm:$0xff] (%p85_p2) }
  0x20   : > { %859 = vmatmul.mubr.msk.f32.vlgmr.msra.gmra.mxu1 %vm50_vm0, %v981_v23  ;;  %827 = vmatprep.subr.mxu0 %v987_v33 }
  0x21   : > { %828 = vmatpush3.msra.mxu0 %v1148_v16  ;;  %847 = vmatprep.mubr.msk.f32.mxu0 %vm989_vm3, %v987_v33 }
  0x22   : > { %829 = vmatprep.subr.mxu0 %v987_v33  ;;  %861 = vmatprep.subr.mxu1 %v987_v33 }
  0x23   : > { %830 = vmatpush3.msra.mxu0 %v1143_v15  ;;  %862 = vmatpush3.msra.mxu1 %v1198_v27 }
  0x24   : > { %831 = vmatprep.subr.mxu0 %v987_v33  ;;  %863 = vmatprep.subr.mxu1 %v987_v33 }
  0x25   : > { %832 = vmatpush3.msra.mxu0 %v1138_v14  ;;  %864 = vmatpush3.msra.mxu1 %v1193_v26 }
  0x26   : > { %833 = vmatprep.subr.mxu0 %v987_v33  ;;  %865 = vmatprep.subr.mxu1 %v987_v33 }
  0x27   : > { %834 = vmatpush3.msra.mxu0 %v1133_v13  ;;  %866 = vmatpush3.msra.mxu1 %v1188_v25 }
  0x28   : > { %835 = vmatprep.subr.mxu0 %v987_v33  ;;  %867 = vmatprep.subr.mxu1 %v987_v33 }
  0x29   : > { %836 = vmatpush3.msra.mxu0 %v1128_v12  ;;  %868 = vmatpush3.msra.mxu1 %v1183_v24 }
  0x2a   : > { %837 = vmatprep.subr.mxu0 %v987_v33  ;;  %869 = vmatprep.mubr.msk.f32.mxu1 %vm989_vm3, %v987_v33 }
  0x2b   : > { %838 = vmatpush3.msra.mxu0 %v1123_v11 }
  0x2c   : > { %839 = vmatprep.subr.mxu0 %v987_v33 }
  0x2d   : > { %840 = vmatpush3.msra.mxu0 %v1118_v10 }
  0x2e   : > { %841 = vmatprep.subr.mxu0 %v987_v33 }
  0x2f   : > { %842 = vmatpush3.msra.mxu0 %v1113_v9 }
  0x30   : > { %843 = vmatprep.subr.mxu0 %v987_v33 }
  0x31   : > { %844 = vmatpush3.msra.mxu0 %v1108_v8 }
  0x32   : > { %845 = vmatprep.subr.mxu0 %v987_v33 }
  0x33   : > { %846 = vmatpush3.msra.mxu0 %v1103_v7 }
  0x84   : > { %v257_v35 = vpop.permute.xlu0 %256 }
  0x85   : > { %v266_v36 = vsel %vm50_vm0, %v981_v23, %v257_v35 }
  0x88   : > { %v260_v37 = vpop.permute.xlu0 %259 }
  0x89   : > { %v268_v39 = vsel %vm267_vm4, %v266_v36, %v260_v37  ;;  %v263_v40 = vpop.permute.xlu1 %262 }
  0x8a   : > { %v270_v43 = vsel %vm269_vm5, %v268_v39, %v263_v40 }
  0xd4   : > { %v173_v38 = vpop.f32.mrf.mxu1 }
  0xd5   : > { %v254_v46 = vadd.f32 %v1203_v28, %v173_v38 }
  0xd6   : > { %v175_v41 = vpop.f32.mrf.mxu1 }
  0xd8   : > { %v244_v42 = vpop.f32.mrf.mxu1 }
  0xd9   : > { %v271_v44 = vmul.f32 %v270_v43, %v244_v42 }
  0xda   : > { %v814_v45 = vpop.f32.mrf.mxu1 }
  0xdb   : > { %848 = vmatmul.mubr.f32.vlgmr.msra.gmra.mxu0 %v271_v44  ;;  %v554_v45 = vld [vmem:[%s1367_s8 + $0x18] sm:$0xff] (%p85_p2) }
  0xdc   :  { %872 = vmatprep.subr.mxu0 (%p85_p2), %v554_v45  ;;  %892 = vmatprep.subr.mxu1 (%p85_p2), %v554_v45 }
  0xdd   :  { %873 = vmatpush3.msra.mxu0 (%p85_p2), %v554_v45 }
  0xe0   : > { %v411_v47 = vpop.f32.mrf.mxu1 }
  0xe1   : > { %v412_v48 = vadd.f32 %v411_v47, %v254_v46  ;;  %v553_v46 = vld [vmem:[%s1367_s8 + $0x10] sm:$0xff] (%p85_p2)  ;;  %v552_v47 = vld [vmem:[%s1367_s8 + $0x8] sm:$0xff] (%p85_p2)  ;;  %s992_s8 = smov (%p85_p2), [#allocation5]  }
  0xe2   : > { %v860_v50 = vpop.f32.mrf.mxu1  ;;  %874 = vmatprep.subr.mxu0 (%p85_p2), %v553_v46  ;;  %s717_s5 = sshll.u32 (%p85_p2), %s992_s8, 4  ;;  %s718_s5 = int_to_ptr.vmem [resolvable:$true] %s717_s5 }
  0xe3   : > { %v415_v51 = vmax.f32 %v412_v48, 0.0  ;;  %875 = vmatpush3.msra.mxu0 (%p85_p2), %v553_v46  ;;  %s927_s21 = scalar_lea.vmem (%p85_p2), %s718_s5, 128  ;;  %p932_p4 = scmp.lt.s32.totalorder (%p85_p2), %s718_s5, %s718_s5 }
  0xe4   :  { %876 = vmatprep.subr.mxu0 (%p85_p2), %v552_v47  ;;  %p928_p3 = scmp.ne.s32.totalorder (%p85_p2), %s718_s5, %s927_s21  ;;  %p933_p5 = scmp.lt.s32.totalorder (%p85_p2), %s927_s21, %s927_s21 }
  0xe5   : > { %v417_v52 = vadd.f32 %v416_v49, %v415_v51  ;;  %877 = vmatpush3.msra.mxu0 (%p85_p2), %v552_v47 }
  0xe6   :  { %878 = vmatprep.subr.mxu0 (%p85_p2), %v551_v1  ;;  %p934_p6 = por (%p85_p2), %p933_p5, %p932_p4 }
  0xe7   : > { %v537_v54 = vsub.f32 %v417_v52, %v981_v23  ;;  %879 = vmatpush3.msra.mxu0 (%p85_p2), %v551_v1 }
  0xe8   :  { %p935_p7 = pnand (%p85_p2), %p934_p6, %p928_p3 }
  0xe9   : > { %v539_v55 = vmul.f32 %v538_v53, %v537_v54 }
  0xeb   : > { %v540_v56 = vadd.f32 %v981_v23, %v539_v55  }
  0xed   :  { %542 = vst.msk [vmem:[#allocation5] sm:$0xff] (%p85_p2), %vm50_vm0, %v540_v56 }
 0x19b   : > { %v338_v57 = vpop.f32.mrf.mxu0 }
 0x19c   : > { %v339_v58 = vadd.f32 %v338_v57, %v175_v41 }
 0x19d   : > { %v849_v59 = vpop.f32.mrf.mxu0 }
 0x19e   : > { %v342_v60 = vmax.f32 %v339_v58, 0.0 }
 0x1a0   : > { %870 = vmatmul.mubr.msk.f32.vlgmr.msra.gmra.mxu1 %vm50_vm0, %v342_v60 }
 0x1a1   :  { %896 = vmatpush3.msra.mxu1 (%p85_p2), %v554_v45 }
 0x1a2   :  { %893 = vmatprep.subr.mxu1 (%p85_p2), %v553_v46 }
 0x1a3   :  { %897 = vmatpush3.msra.mxu1 (%p85_p2), %v553_v46 }
 0x1a4   :  { %894 = vmatprep.subr.mxu1 (%p85_p2), %v552_v47 }
 0x1a5   :  { %898 = vmatpush3.msra.mxu1 (%p85_p2), %v552_v47 }
 0x1a6   :  { %895 = vmatprep.subr.mxu1 (%p85_p2), %v551_v1 }
 0x1a7   :  { %899 = vmatpush3.msra.mxu1 (%p85_p2), %v551_v1 }
 0x260   : > { %v493_v61 = vpop.f32.mrf.mxu1 }
 0x261   : > { %v494_v62 = vadd.f32 %v1208_v29, %v493_v61 }
 0x262   : > { %v871_v63 = vpop.f32.mrf.mxu1 }
 0x263   : > { %v497_v0 = vsel %vm50_vm0, %v494_v62, 0.0 }
 0x264   : > { %498 = vadd.xlane.f32.xlu1 %v497_v0 }
 0x2ed   : > { %v499_v32 = vpop.xlane.xlu1 %498 }
 0x2ee   : > { %v501_v33 = vmul.f32 0.03125, %v499_v32 }
 0x2f0   : > { %v502_v34 = vsub.f32 %v494_v62, %v501_v33 }
 0x2f2   : > { %v503_v35 = vmul.f32 %v502_v34, %v502_v34 }
 0x2f4   : > { %v504_v23 = vsel %vm50_vm0, %v503_v35, 0.0 }
 0x2f5   : > { %505 = vadd.xlane.f32.xlu0 %v504_v23  ;;  %v1373_v23 = vmov %v540_v56 }
 0x37e   : > { %v506_v36 = vpop.xlane.xlu0 %505 }
 0x37f   : > { %v507_v37 = vmul.f32 0.03125, %v506_v36 }
 0x381   : > { %v508_v38 = vadd.f32 1e-05, %v507_v37 }
 0x383   : > { %925 = vrsqrt.f32 %v508_v38 }
 0x390   : > { %v926_v39 = vpop.eup %925 }
 0x391   : > { %v510_v40 = vmul.f32 %v926_v39, %v502_v34 }
 0x393   : > { %v517_v41 = vmul.f32 %v1213_v30, %v510_v40 }
 0x395   : > { %v524_v42 = vadd.f32 %v1218_v31, %v517_v41 }
 0x397   : > { %v525_v43 = vmax.f32 %v524_v42, 0.0  ;;  %87 = sbr.rel (!%p85_p2) target bundleno = 15 (0xf), region = 89 }
 0x399   : > { %v526_v44 = vadd.f32 %v525_v43, %v342_v60 }
 0x39b   : > { %528 = vst.msk [vmem:[%s527_s14] sm:$0xff] %vm50_vm0, %v526_v44 }
 0x3a2   :  { %v543_v2 = vld [vmem:[#allocation2] sm:$0xff]  ;;  %v544_v4 = vld [vmem:[#allocation2 + $0x8] sm:$0xff]  ;;  %v545_v6 = vld [vmem:[#allocation2 + $0x10] sm:$0xff] }
 0x3a3   :  { %v547_v3 = vld [vmem:[#allocation2 + $0x20] sm:$0xff]  ;;  %v548_v5 = vld [vmem:[#allocation2 + $0x28] sm:$0xff]  ;;  %v549_v7 = vld [vmem:[#allocation2 + $0x30] sm:$0xff]  ;;  %880 = vmatprep.mubr.msk.f32.mxu0 %vm50_vm0, %v543_v2 }
 0x3a4   :  { %886 = vmatprep.mubr.msk.f32.mxu1 %vm50_vm0, %v547_v3  ;;  %881 = vmatmul.mubr.msk.f32.vlgmr.msra.gmra.mxu0 %vm50_vm0, %v544_v4  ;;  %v546_v8 = vld [vmem:[#allocation2 + $0x18] sm:$0xff] }
 0x3a5   :  { %887 = vmatmul.mubr.msk.f32.vlgmr.msra.gmra.mxu1 %vm50_vm0, %v548_v5  ;;  %883 = vmatprep.mubr.msk.f32.mxu0 %vm50_vm0, %v545_v6  ;;  %v550_v9 = vld [vmem:[#allocation2 + $0x38] sm:$0xff] }
 0x3a6   :  { %889 = vmatprep.mubr.msk.f32.mxu1 %vm50_vm0, %v549_v7 }
 0x3a8   :  { %884 = vmatmul.mubr.msk.f32.gmra.mxu0 %vm50_vm0, %v546_v8 }
 0x3a9   :  { %890 = vmatmul.mubr.msk.f32.gmra.mxu1 %vm50_vm0, %v550_v9 }
 0x3aa   :  { %938 = shalt.err (!%p935_p7)
}
 0x3ab   :  { %720 = dma.vmem_to_hbm [thread:$0]  %s718_s5, 128, %s1372_s13, [#allocation6]   ;;  %v758_v10 = vld [vmem:[%s1368_s9] ss:$0 sm:$0xff] }
 0x3ac   :  { %s993_s25 = smov [#allocation3]  }
 0x3ad   :  { %s704_s26 = sshll.u32 %s993_s25, 4  ;;  %s705_s26 = int_to_ptr.vmem [resolvable:$true] %s704_s26 }
 0x3ae   :  { %s947_s9 = scalar_lea.vmem %s705_s26, 1024  ;;  %p952_p9 = scmp.lt.s32.totalorder %s705_s26, %s705_s26 }
 0x3af   :  { %p948_p8 = scmp.ne.s32.totalorder %s705_s26, %s947_s9  ;;  %p953_p10 = scmp.lt.s32.totalorder %s947_s9, %s947_s9 }
 0x3b1   :  { %p954_p11 = por %p953_p10, %p952_p9 }
 0x3b3   :  { %p955_p12 = pnand %p954_p11, %p948_p8 }
 0x464   :  { %v882_v11 = vpop.f32.mrf.mxu0 }
 0x465   :  { %v888_v12 = vpop.f32.mrf.mxu1  ;;  %v658_v13 = vadd.f32 %v882_v11, %v758_v10 }
 0x466   :  { %v678_v14 = vadd.f32 %v888_v12, %v758_v10  ;;  %v652_v15 = vpop.f32.mrf.mxu0 }
 0x467   :  { %v672_v16 = vpop.f32.mrf.mxu1  ;;  %692 = vst [vmem:[#allocation3 + $0x8] sm:$0xff] %v658_v13  ;;  %v653_v17 = vadd.f32 %v758_v10, %v652_v15 }
 0x468   :  { %696 = vst [vmem:[#allocation3 + $0x28] sm:$0xff] %v678_v14  ;;  %v673_v18 = vadd.f32 %v758_v10, %v672_v16  ;;  %v885_v19 = vpop.f32.mrf.mxu0 }
 0x469   :  { %v891_v20 = vpop.f32.mrf.mxu1  ;;  %691 = vst [vmem:[#allocation3] sm:$0xff] %v653_v17  ;;  %v668_v21 = vadd.f32 %v885_v19, %v758_v10 }
 0x46a   :  { %695 = vst [vmem:[#allocation3 + $0x20] sm:$0xff] %v673_v18  ;;  %v688_v22 = vadd.f32 %v891_v20, %v758_v10  ;;  %v662_v24 = vpop.f32.mrf.mxu0 }
 0x46b   :  { %v682_v25 = vpop.f32.mrf.mxu1  ;;  %694 = vst [vmem:[#allocation3 + $0x18] sm:$0xff] %v668_v21  ;;  %v663_v26 = vadd.f32 %v758_v10, %v662_v24 }
 0x46c   :  { %698 = vst [vmem:[#allocation3 + $0x38] sm:$0xff] %v688_v22  ;;  %v683_v27 = vadd.f32 %v758_v10, %v682_v25 }
 0x46d   :  { %693 = vst [vmem:[#allocation3 + $0x10] sm:$0xff] %v663_v26 }
 0x46e   :  { %697 = vst [vmem:[#allocation3 + $0x30] sm:$0xff] %v683_v27 }
 0x46f   :  { %958 = shalt.err (!%p955_p12)
}
 0x470   :  { %s994_s13 = smov 128   ;;  %s995_s6 = smov 8  }
 0x471   :  { %710 = dma.vmem_to_hbm [thread:$0]  %s705_s26, 1024, %s1371_s12, [#allocation4], %s994_s13, %s994_s13, %s995_s6  }
 0x472   :  { %975 = dma.done.wait [#allocation4], 1024  }
 0x473   :  { %976 = vsyncadd [#allocation4], 4294966272 }
 0x474   :  { %977 = dma.done.wait [#allocation6], 128  }
 0x475   :  { %978 = vsyncadd [#allocation6], 4294967168 }
 0x476   :  { %727 = vsyncpa [#allocation4], 1 }
 0x477   :  { %728 = vsyncpa [#allocation6], 1 }

</bundles_post_ra>
